<compile_context>
chip_gen: v6e
topology: v6e:2x2x1
jax: 0.10.0
libtpu: 0.0.40
codegen_flags: <defaults>
</compile_context>

<pallas_src>
import functools

import jax
import jax.numpy as jnp
import numpy as np
from jax.experimental import pallas as pl
from jax.experimental.pallas import tpu as pltpu


def _coord_kernel(x_ref, w_ref, g_ref, hm_ref, co_ref):
    # x_ref: (C, HW) backbone dtype; w_ref: (L, C); g_ref: (2, HW) f32
    # hm_ref: (L, HW) f32; co_ref: (L, 2) f32
    x = x_ref[...].astype(jnp.bfloat16)                   # in-kernel cast (no-op if bf16)
    w = w_ref[...].astype(jnp.bfloat16)

    # 1x1 conv == channel matmul (bf16 x bf16 -> f32 accumulate on the MXU).
    logits = jnp.dot(w, x, preferred_element_type=jnp.float32)     # (L, HW) f32

    # flat_softmax over the flattened spatial axis (exact normalization).
    m = jnp.max(logits, axis=-1, keepdims=True)
    e = jnp.exp(logits - m)
    s = jnp.sum(e, axis=-1, keepdims=True)
    inv = pl.reciprocal(s, approx=False)                   # exact: heatmaps sum to 1
    h = e * inv                                            # (L, HW) f32 heatmap
    hm_ref[...] = h

    # dsnt: expected coordinate = sum_j h[:, j] * g[:, j]  (XLU lane reductions).
    gx = g_ref[0:1, :]                                     # (1, HW)
    gy = g_ref[1:2, :]                                     # (1, HW)
    co_ref[:, 0:1] = jnp.sum(h * gx, axis=-1, keepdims=True)   # (L, 1) x-coord
    co_ref[:, 1:2] = jnp.sum(h * gy, axis=-1, keepdims=True)   # (L, 1) y-coord


def coord_regression_forward(fcn_out, weight):
    """fcn_out: (B, 512, H, W) NCHW (f32 or bf16); weight: (L, 512).
    Returns (coords, heatmaps) matching the PyTorch module."""
    B, C, H, W = fcn_out.shape
    L = weight.shape[0]
    HW = H * W

    # Pure reshape only — the dtype cast happens inside the kernel (no extra HBM pass).
    x = fcn_out.reshape(B, C, HW)

    # Normalized pixel coordinates, dsntnn convention: v[j] = (2j - n + 1) / n, flattened
    # row-major over (H, W).  Tiny (2, HW) f32 constant; constant block index -> DMA'd once.
    xs = (2.0 * jnp.arange(W, dtype=jnp.float32) - (W - 1)) / W
    ys = (2.0 * jnp.arange(H, dtype=jnp.float32) - (H - 1)) / H
    gx = jnp.broadcast_to(xs[None, :], (H, W)).reshape(HW)
    gy = jnp.broadcast_to(ys[:, None], (H, W)).reshape(HW)
    g = jnp.stack([gx, gy], axis=0)                        # (2, HW) f32

    # grid=(B,): one batch per grid step.  "parallel" lets v7x shard the two batches
    # across its two TensorCores; on 1-TC chips it is a 2-step serial loop (per-batch
    # VMEM footprint ~0.5 MB with double buffering, far under every VMEM limit).
    heatmaps_flat, coords = pl.pallas_call(
        _coord_kernel,
        out_shape=(jax.ShapeDtypeStruct((B, L, HW), jnp.float32),
                   jax.ShapeDtypeStruct((B, L, 2), jnp.float32)),
        grid=(B,),
        in_specs=[
            pl.BlockSpec((None, C, HW), lambda b: (b, 0, 0)),   # per-batch activations
            pl.BlockSpec((L, C), lambda b: (0, 0)),             # weights (resident)
            pl.BlockSpec((2, HW), lambda b: (0, 0)),            # coord vectors (resident)
        ],
        out_specs=(
            pl.BlockSpec((None, L, HW), lambda b: (b, 0, 0)),
            pl.BlockSpec((None, L, 2), lambda b: (b, 0, 0)),
        ),
        compiler_params=pltpu.CompilerParams(
            dimension_semantics=("parallel",)),
    )(x, weight, g)

    heatmaps = heatmaps_flat.reshape(B, L, H, W)
    return coords, heatmaps


def _reference(fcn_out, weight):
    """Pure-JAX reference mirroring hm_conv -> dsntnn.flat_softmax -> dsntnn.dsnt,
    using the same bf16-compute / f32-accumulate precision path as the kernel."""
    B, C, H, W = fcn_out.shape
    xb = fcn_out.astype(jnp.bfloat16)
    wb = weight.astype(jnp.bfloat16)
    logits = jnp.einsum('lc,bchw->blhw', wb, xb,
                        preferred_element_type=jnp.float32)      # 1x1 conv, no bias
    flat = logits.reshape(B, -1, H * W)
    hm = jax.nn.softmax(flat, axis=-1).reshape(B, -1, H, W)
    xs = (2.0 * jnp.arange(W, dtype=jnp.float32) - (W - 1)) / W
    ys = (2.0 * jnp.arange(H, dtype=jnp.float32) - (H - 1)) / H
    ex = jnp.einsum('blhw,w->bl', hm, xs)
    ey = jnp.einsum('blhw,h->bl', hm, ys)
    return jnp.stack([ex, ey], axis=-1), hm


if __name__ == "__main__":
    B, C_IN, H, W = 2, 512, 16, 16       # module fixes C_IN = 512
    N_LOCATIONS = 8

    key = jax.random.PRNGKey(0)
    k_x, k_w = jax.random.split(key)
    # Backbone activations arrive in bf16 (so the in-kernel cast is a no-op on this path).
    fcn_out = jax.random.normal(k_x, (B, C_IN, H, W),
                                dtype=jnp.float32).astype(jnp.bfloat16)

    # Deterministic Conv2d(512, L, 1, bias=False)-style init (kaiming-uniform bound).
    bound = 1.0 / np.sqrt(C_IN)
    weight = jax.random.uniform(k_w, (N_LOCATIONS, C_IN),
                                minval=-bound, maxval=bound, dtype=jnp.float32)

    coords, heatmaps = coord_regression_forward(fcn_out, weight)
    coords, heatmaps = jax.block_until_ready((coords, heatmaps))

    coords_ref, heatmaps_ref = _reference(fcn_out, weight)
    # bf16 matmul inputs -> bf16-level tolerances; softmax normalization is exact.
    np.testing.assert_allclose(np.asarray(coords), np.asarray(coords_ref),
                               rtol=1e-2, atol=2e-3)
    np.testing.assert_allclose(np.asarray(heatmaps), np.asarray(heatmaps_ref),
                               rtol=1e-2, atol=1e-5)
    assert coords.shape == (B, N_LOCATIONS, 2)
    assert heatmaps.shape == (B, N_LOCATIONS, H, W)

    print("KERNEL_OK")
</pallas_src>

<mosaic_0001>
module attributes {stable_mosaic.version = 11 : i64} {
  func.func @_coord_kernel(%arg0: i32, %arg1: memref<1x512x256xbf16, #tpu.memory_space<vmem>>, %arg2: memref<8x512xf32, #tpu.memory_space<vmem>>, %arg3: memref<2x256xf32, #tpu.memory_space<vmem>>, %arg4: memref<1x8x256xf32, #tpu.memory_space<vmem>>, %arg5: memref<1x8x2xf32, #tpu.memory_space<vmem>>) attributes {dimension_semantics = [#tpu.dimension_semantics<parallel>], iteration_bounds = array<i64: 2>, scalar_prefetch = 0 : i64, scratch_operands = 0 : i64, tpu.core_type = #tpu.core_type<tc>, window_params = [{transform_indices = @transform_0, window_bounds = array<i64: 1, 512, 256>}, {pipeline_mode = #tpu.pipeline_mode<synchronous>, transform_indices = @transform_1, window_bounds = array<i64: 8, 512>}, {pipeline_mode = #tpu.pipeline_mode<synchronous>, transform_indices = @transform_2, window_bounds = array<i64: 2, 256>}, {transform_indices = @transform_3, window_bounds = array<i64: 1, 8, 256>}, {transform_indices = @transform_4, window_bounds = array<i64: 1, 8, 2>}]} {
    %c0 = arith.constant 0 : index
    %c0_0 = arith.constant 0 : index
    %c0_1 = arith.constant 0 : index
    %0 = vector.load %arg1[%c0, %c0_0, %c0_1] : memref<1x512x256xbf16, #tpu.memory_space<vmem>>, vector<1x512x256xbf16>
    %1 = vector.shape_cast %0 : vector<1x512x256xbf16> to vector<512x256xbf16>
    %c0_2 = arith.constant 0 : index
    %c0_3 = arith.constant 0 : index
    %2 = vector.load %arg2[%c0_2, %c0_3] : memref<8x512xf32, #tpu.memory_space<vmem>>, vector<8x512xf32>
    %3 = arith.truncf %2 : vector<8x512xf32> to vector<8x512xbf16>
    %cst = arith.constant dense<0.000000e+00> : vector<8x256xf32>
    %4 = tpu.matmul %3, %1, %cst {dimension_numbers = #tpu.dot_dimension_numbers<[1], [0], [0], [1], [0, 0, 1, 1], [], []>} : vector<8x512xbf16>, vector<512x256xbf16>, vector<8x256xf32> -> vector<8x256xf32>
    %cst_4 = arith.constant dense<0xFF800000> : vector<8xf32>
    %5 = vector.multi_reduction <maximumf>, %4, %cst_4 [1] : vector<8x256xf32> to vector<8xf32>
    %6 = vector.shape_cast %5 : vector<8xf32> to vector<8x1xf32>
    %7 = vector.broadcast %6 : vector<8x1xf32> to vector<8x256xf32>
    %8 = arith.subf %4, %7 : vector<8x256xf32>
    %9 = math.exp %8 : vector<8x256xf32>
    %cst_5 = arith.constant dense<0.000000e+00> : vector<8xf32>
    %10 = vector.multi_reduction <add>, %9, %cst_5 [1] : vector<8x256xf32> to vector<8xf32>
    %11 = vector.shape_cast %10 : vector<8xf32> to vector<8x1xf32>
    %12 = tpu.reciprocal %11 : vector<8x1xf32> -> vector<8x1xf32>
    %13 = vector.broadcast %12 : vector<8x1xf32> to vector<8x256xf32>
    %14 = arith.mulf %9, %13 : vector<8x256xf32>
    %c0_6 = arith.constant 0 : index
    %c0_7 = arith.constant 0 : index
    %c0_8 = arith.constant 0 : index
    %15 = vector.load %arg4[%c0_6, %c0_7, %c0_8] : memref<1x8x256xf32, #tpu.memory_space<vmem>>, vector<1x8x256xf32>
    %16 = vector.shape_cast %15 : vector<1x8x256xf32> to vector<8x256xf32>
    %17 = vector.shape_cast %14 : vector<8x256xf32> to vector<1x8x256xf32>
    tpu.vector_store %arg4[%c0_6, %c0_7, %c0_8], %17 {strides = array<i32>} : memref<1x8x256xf32, #tpu.memory_space<vmem>>, vector<1x8x256xf32>,
    %c0_9 = arith.constant 0 : index
    %c0_10 = arith.constant 0 : index
    %18 = vector.load %arg3[%c0_9, %c0_10] : memref<2x256xf32, #tpu.memory_space<vmem>>, vector<1x256xf32>
    %c1 = arith.constant 1 : index
    %c0_11 = arith.constant 0 : index
    %19 = vector.load %arg3[%c1, %c0_11] : memref<2x256xf32, #tpu.memory_space<vmem>>, vector<1x256xf32>
    %20 = vector.broadcast %18 : vector<1x256xf32> to vector<8x256xf32>
    %21 = arith.mulf %14, %20 : vector<8x256xf32>
    %cst_12 = arith.constant dense<0.000000e+00> : vector<8xf32>
    %22 = vector.multi_reduction <add>, %21, %cst_12 [1] : vector<8x256xf32> to vector<8xf32>
    %23 = vector.shape_cast %22 : vector<8xf32> to vector<8x1xf32>
    %c0_13 = arith.constant 0 : index
    %c0_14 = arith.constant 0 : index
    %c0_15 = arith.constant 0 : index
    %24 = vector.load %arg5[%c0_13, %c0_14, %c0_15] : memref<1x8x2xf32, #tpu.memory_space<vmem>>, vector<1x8x1xf32>
    %25 = vector.shape_cast %24 : vector<1x8x1xf32> to vector<8x1xf32>
    %26 = vector.shape_cast %23 : vector<8x1xf32> to vector<1x8x1xf32>
    tpu.vector_store %arg5[%c0_13, %c0_14, %c0_15], %26 {strides = array<i32>} : memref<1x8x2xf32, #tpu.memory_space<vmem>>, vector<1x8x1xf32>,
    %27 = vector.broadcast %19 : vector<1x256xf32> to vector<8x256xf32>
    %28 = arith.mulf %14, %27 : vector<8x256xf32>
    %cst_16 = arith.constant dense<0.000000e+00> : vector<8xf32>
    %29 = vector.multi_reduction <add>, %28, %cst_16 [1] : vector<8x256xf32> to vector<8xf32>
    %30 = vector.shape_cast %29 : vector<8xf32> to vector<8x1xf32>
    %c0_17 = arith.constant 0 : index
    %c0_18 = arith.constant 0 : index
    %c1_19 = arith.constant 1 : index
    %31 = vector.load %arg5[%c0_17, %c0_18, %c1_19] : memref<1x8x2xf32, #tpu.memory_space<vmem>>, vector<1x8x1xf32>
    %32 = vector.shape_cast %31 : vector<1x8x1xf32> to vector<8x1xf32>
    %33 = vector.shape_cast %30 : vector<8x1xf32> to vector<1x8x1xf32>
    tpu.vector_store %arg5[%c0_17, %c0_18, %c1_19], %33 {strides = array<i32>} : memref<1x8x2xf32, #tpu.memory_space<vmem>>, vector<1x8x1xf32>,
    return
  }
  func.func @transform_0(%arg0: i32) -> (i32, i32, i32) {
    %c0_i32 = arith.constant 0 : i32
    %c0_i32_0 = arith.constant 0 : i32
    %c0_i32_1 = arith.constant 0 : i32
    return %arg0, %c0_i32, %c0_i32_0 : i32, i32, i32
  }
  func.func @transform_1(%arg0: i32) -> (i32, i32) {
    %c0_i32 = arith.constant 0 : i32
    %c0_i32_0 = arith.constant 0 : i32
    %c0_i32_1 = arith.constant 0 : i32
    return %c0_i32, %c0_i32_0 : i32, i32
  }
  func.func @transform_2(%arg0: i32) -> (i32, i32) {
    %c0_i32 = arith.constant 0 : i32
    %c0_i32_0 = arith.constant 0 : i32
    %c0_i32_1 = arith.constant 0 : i32
    return %c0_i32, %c0_i32_0 : i32, i32
  }
  func.func @transform_3(%arg0: i32) -> (i32, i32, i32) {
    %c0_i32 = arith.constant 0 : i32
    %c0_i32_0 = arith.constant 0 : i32
    %c0_i32_1 = arith.constant 0 : i32
    return %arg0, %c0_i32, %c0_i32_0 : i32, i32, i32
  }
  func.func @transform_4(%arg0: i32) -> (i32, i32, i32) {
    %c0_i32 = arith.constant 0 : i32
    %c0_i32_0 = arith.constant 0 : i32
    %c0_i32_1 = arith.constant 0 : i32
    return %arg0, %c0_i32, %c0_i32_0 : i32, i32, i32
  }
}

</mosaic_0001>

<bundles_post_ra>
// kernel: tpu_custom_call.1
= control target key start
LH: loop header
LB: loop body
LE: loop exit
PB: predicated region body
PF: predicated region fallthrough
CT: control target
= control target key end

     0   :  { %10 = vsyncpa [#allocation3], 0  ;;  %s1604_s0 = inlined_call_operand.hbm [shape: bf16[2,512,256], index: 0, kind: input, shape index: {}]   ;;  %s1605_s1 = inlined_call_operand.hbm [shape: f32[8,512], index: 1, kind: input, shape index: {}]   ;;  %s1606_s2 = inlined_call_operand.hbm [shape: f32[2,256], index: 2, kind: input, shape index: {}]   ;;  %s1607_s3 = inlined_call_operand.hbm [shape: f32[2,8,256], index: 3, kind: output, shape index: {0}]   ;;  %s1608_s4 = inlined_call_operand.vmem [shape: f32[2,8,2], index: 4, kind: output, shape index: {1}]  }
   0x1   :  { %12 = vsyncpa [#allocation3 + $0x1], 0 }
   0x2   :  { %13 = vsyncpa [#allocation6], 0 }
   0x3   :  { %14 = vsyncpa [#allocation4], 0 }
   0x4   :  { %16 = vsyncpa [#allocation4 + $0x1], 0  ;;  %s1354_s15 = smov 0   ;;  %s1356_s16 = smov 0  }
   0x5   :  { %s1358_s17 = smov 0   ;;  %s1360_s18 = smov 0  }
   0x6 LB: > { %s1375_s19 = sadd.s32 4294967295, %s1321_s18   ;;  %s917_s20 = sadd.s32 4294967294, %s1321_s18   ;;  %s1321_s18 = sphi %s1360_s18, %s1631_s18   ;;  %s1317_s17 = sphi %s1358_s17, %s1630_s17   ;;  %s1313_s16 = sphi %s1356_s16, %s1629_s16   ;;  %s1309_s15 = sphi %s1354_s15, %s1628_s15  }
   0x7   : > { %s1379_s21 = sadd.s32 1, %s1321_s18   ;;  %s29_s22 = sadd.s32 1, %s1317_s17 }
   0x8   : > { %s26_s23 = ssub.s32 %s1321_s18, %s1379_s21  ;;  %p36_p0 = scmp.ne.s32.totalorder %s1317_s17, %s1313_s16 }
   0x9   : > { %p27_p1 = scmp.eq.s32.totalorder %s26_s23, 0  ;;  %p37_p2 = scmp.eq.s32.totalorder %s1321_s18, 0 }
   0xa   : > { %p42_p3 = scmp.ne.s32.totalorder %s1313_s16, %s1309_s15  ;;  %p1609_p4 = scmp.eq.s32.totalorder %s1375_s19, 0 }
   0xb   : > { %s1391_s24 = scalar_select %p27_p1, %s1317_s17, %s29_s22  }
   0xc   : > { %p1393_p5 = por %p37_p2, %p36_p0  ;;  %p1399_p6 = por %p1609_p4, %p42_p3 }
   0xd   : > { %p108_p7 = scmp.eq.s32.totalorder %s1375_s19, 1  ;;  %p114_p8 = scmp.eq.s32.totalorder %s917_s20, 1 }
   0xe   : > { %s1614_s26 = scalar_select %p1399_p6, 1, 0 }
   0xf   : > { %p918_p9 = scmp.ge.s32.totalorder %s1321_s18, 1  ;;  %p147_p10 = scmp.lt.s32.totalorder %s1321_s18, 3 }
  0x10   : > { %p1406_p11 = por %p108_p7, %p36_p0  ;;  %p1410_p12 = por %p114_p8, %p42_p3 }
  0x11   : > { %p1414_p13 = pnand %p918_p9, %p147_p10  ;;  %s1323_s30 = smov [#allocation5]  }
  0x12   : > { %s1615_s27 = scalar_select %p1406_p11, 1, 0 }
  0x13   : > { %s1616_s28 = scalar_select %p1410_p12, 1, 0 }
  0x14   : > { %s1617_s29 = scalar_select %p1414_p13, 1, 0 }
  0x15   : > { %p1014_p2 = pneg %p1414_p13  ;;  %s160_s5 = sshll.u32 %s1323_s30, 4  ;;  %s161_s5 = int_to_ptr.vmem [resolvable:$true] %s160_s5 }
  0x16   : > { %p1031_p4 = scmp.lt.s32.totalorder %s1321_s18, 2  ;;  %p1618_p0 = scmp.eq.s32.totalorder %s1375_s19, 0 }
  0x17   : > { %s1324_s8 = smov [#allocation7]   ;;  %s1184_s10 = scalar_lea.vmem %s161_s5, 512 }
  0x18   : > { %p1424_p7 = pnand %p1014_p2, %p1618_p0  ;;  %p1430_p3 = pnand %p1031_p4, %p1393_p5 }
  0x19   : > { %s171_s9 = sshll.u32 %s1324_s8, 4  ;;  %p1185_p9 = scmp.ne.s32.totalorder %s161_s5, %s1184_s10  ;;  %s172_s9 = int_to_ptr.vmem [resolvable:$true] %s171_s9 }
  0x1a   : > { %p1175_p8 = pneg %p1424_p7  ;;  %p1192_p0 = scmp.lt.s32.totalorder %s161_s5, %s161_s5 }
  0x1b   : > { %p1193_p1 = scmp.lt.s32.totalorder %s1184_s10, %s1184_s10 }
  0x1c   : > { %p1187_p10 = pnand %p1185_p9, %p1175_p8 }
  0x1d   : > { %p1194_p12 = por %p1193_p1, %p1192_p0 }
  0x1e   : > { %p1188_p2 = pneg %p1187_p10 }
  0x20   : > { %p1195_p11 = pnand %p1194_p12, %p1188_p2 }
  0x22   : > { %1198 = shalt.err (!%p1195_p11)
}
  0x23   : > { %1017 = dma.hbm_to_vmem [thread:$0]  (!%p1424_p7), %s1605_s1, 512, %s161_s5, [#allocation6]  }
  0x24   : > { %s182_s13 = sand.u32 1, %s1317_s17   ;;  %s1210_s14 = scalar_lea.vmem %s172_s9, 64 }
  0x25   : > { %p1211_p4 = scmp.ne.s32.totalorder %s172_s9, %s1210_s14  ;;  %p1218_p10 = scmp.lt.s32.totalorder %s172_s9, %s172_s9 }
  0x26   : > { %p1219_p6 = scmp.lt.s32.totalorder %s1210_s14, %s1210_s14 }
  0x27   : > { %p1213_p5 = pnand %p1211_p4, %p1175_p8 }
  0x28   : > { %p1220_p1 = por %p1219_p6, %p1218_p10 }
  0x29   : > { %p1214_p9 = pneg %p1213_p5 }
  0x2b   : > { %p1221_p12 = pnand %p1220_p1, %p1214_p9 }
  0x2d   : > { %1224 = shalt.err (!%p1221_p12)
}
  0x2e   : > { %1020 = dma.hbm_to_vmem [thread:$0]  (!%p1424_p7), %s1606_s2, 64, %s172_s9, [#allocation6]  }
  0x2f   : > { %s922_s23 = sshll.u32 %s182_s13, 9  ;;  %s1000_s25 = sshll.u32 %s1321_s18, 13 }
  0x30   : > { %s1457_s8 = scalar_lea.hbm %s1604_s0, %s1000_s25  ;;  %s186_s10 = scalar_lea.vmem [#allocation2], %s922_s23 }
  0x31   : > { %s193_s11 = sshll.u32 %s186_s10, 4  ;;  %s1461_s6 = scalar_lea.sflag [#allocation3], %s182_s13  ;;  %s1459_s11 = int_to_ptr.vmem [resolvable:$true] %s193_s11 }
  0x32   : > { %s1225_s12 = scalar_lea.hbm %s1457_s8, 8192  ;;  %p1227_p11 = pneg %p1430_p3 }
  0x33   : > { %p1226_p6 = scmp.ne.s32.totalorder %s1457_s8, %s1225_s12  ;;  %s1230_s20 = scalar_lea.hbm %s1604_s0, 16384 }
  0x34   : > { %p1231_p2 = scmp.lt.s32.totalorder %s1457_s8, %s1604_s0  ;;  %p1232_p0 = scmp.lt.s32.totalorder %s1230_s20, %s1225_s12 }
  0x35   : > { %p1228_p7 = pnand %p1227_p11, %p1226_p6 }
  0x36   : > { %p1233_p4 = por %p1232_p0, %p1231_p2 }
  0x37   : > { %p1229_p8 = pneg %p1228_p7 }
  0x39   : > { %p1234_p5 = pnand %p1233_p4, %p1229_p8 }
  0x3b   : > { %1237 = shalt.err (!%p1234_p5)
}
  0x3c   : > { %s1238_s13 = scalar_lea.vmem %s1459_s11, 8192  ;;  %s1325_s23 = smov [#allocation2]  }
  0x3d   : > { %p1239_p9 = scmp.ne.s32.totalorder %s1459_s11, %s1238_s13  ;;  %s1243_s30 = sshll.u32 %s1325_s23, 4  ;;  %s1244_s30 = int_to_ptr.vmem [resolvable:$false] %s1243_s30 }
  0x3e   : > { %s1245_s5 = scalar_lea.vmem %s1244_s30, 16384  ;;  %p1246_p12 = scmp.lt.s32.totalorder %s1459_s11, %s1244_s30 }
  0x3f   : > { %p1241_p10 = pnand %p1239_p9, %p1227_p11  ;;  %p1247_p6 = scmp.lt.s32.totalorder %s1245_s5, %s1238_s13 }
  0x41   : > { %p1242_p1 = pneg %p1241_p10  ;;  %p1248_p7 = por %p1247_p6, %p1246_p12 }
  0x43   : > { %p1249_p13 = pnand %p1248_p7, %p1242_p1 }
  0x45   : > { %1252 = shalt.err (!%p1249_p13)
}
  0x46   : > { %s1326_s10 = smov 128   ;;  %s1327_s12 = smov 8  }
  0x47   : > { %1024 = dma.hbm_to_vmem [thread:$0]  (!%p1430_p3), %s1457_s8, 8192, %s1459_s11, %s1461_s6, %s1326_s10, %s1326_s10, %s1327_s12  }
  0x48   : > { %p1621_p11 = scmp.ne.s32.totalorder %s1617_s29, 0 }
  0x49   : > { %s1485_s9 = sand.u32 (!%p1621_p11), 1, %s1313_s16   ;;  %p1622_p13 = scmp.ne.s32.totalorder (!%p1621_p11), %s1614_s26, 0 }
  0x4a   : > { %205 = sbr.rel (%p1621_p11) target bundleno = 808 (0x328), region = 32  ;;  %s926_s14 = sshll.u32 (!%p1621_p11), %s1485_s9, 9 }
  0x4b   : > { %s208_s20 = scalar_lea.sflag (!%p1621_p11), [#allocation3], %s1485_s9  ;;  %s1489_s22 = scalar_lea.vmem (!%p1621_p11), [#allocation2], %s926_s14 }
  0x4f   : > { %1296 = dma.done.wait (%p1622_p13), %s208_s20, 8192  }
  0x50   : > { %1298 = vsyncadd (%p1622_p13), %s208_s20, 4294959104  ;;  %p1623_p3 = scmp.eq.s32.totalorder %s1375_s19, 0 }
  0x52   : > { %1300 = dma.done.wait (%p1623_p3), [#allocation6], 576   ;;  %p1624_p8 = pmov %p1623_p3 }
  0x53   : > { %v1071_v0 = vld [vmem:[%s1489_s22 + $0x74] ss:$8 sps:$4 sm:$0xff]   ;;  %v1075_v2 = vld [vmem:[%s1489_s22 + $0x70] ss:$8 sps:$4 sm:$0xff]   ;;  %v1077_v4 = vld [vmem:[%s1489_s22 + $0x64] ss:$8 sps:$4 sm:$0xff]  }
  0x54   : > { %1302 = vsyncadd (%p1624_p8), [#allocation6], 4294966720  ;;  %v1073_v1 = vld [vmem:[%s1489_s22 + $0x174] ss:$8 sps:$4 sm:$0xff]   ;;  %644 = vmatprep.subr.bf16.mxu0 %v1071_v0  ;;  %v1076_v3 = vld [vmem:[%s1489_s22 + $0x170] ss:$8 sps:$4 sm:$0xff]  }
  0x55   : > { %685 = vmatprep.subr.bf16.mxu1 %v1073_v1  ;;  %645 = vmatpush1.bf16.msra.mxu0 %v1075_v2  ;;  %v1079_v5 = vld [vmem:[%s1489_s22 + $0x164] ss:$8 sps:$4 sm:$0xff]   ;;  %v1081_v6 = vld [vmem:[%s1489_s22 + $0x60] ss:$8 sps:$4 sm:$0xff]   ;;  %v1083_v8 = vld [vmem:[%s1489_s22 + $0x54] ss:$8 sps:$4 sm:$0xff]  }
  0x56   : > { %686 = vmatpush1.bf16.msra.mxu1 %v1076_v3  ;;  %646 = vmatprep.subr.bf16.mxu0 %v1077_v4  ;;  %v1082_v7 = vld [vmem:[%s1489_s22 + $0x160] ss:$8 sps:$4 sm:$0xff]   ;;  %v1085_v9 = vld [vmem:[%s1489_s22 + $0x154] ss:$8 sps:$4 sm:$0xff]   ;;  %v1087_v10 = vld [vmem:[%s1489_s22 + $0x50] ss:$8 sps:$4 sm:$0xff]  }
  0x57   : > { %687 = vmatprep.subr.bf16.mxu1 %v1079_v5  ;;  %v1088_v11 = vld [vmem:[%s1489_s22 + $0x150] ss:$8 sps:$4 sm:$0xff]   ;;  %v1089_v12 = vld [vmem:[%s1489_s22 + $0x44] ss:$8 sps:$4 sm:$0xff]   ;;  %v1093_v14 = vld [vmem:[%s1489_s22 + $0x40] ss:$8 sps:$4 sm:$0xff]  }
  0x58   : > { %v1091_v13 = vld [vmem:[%s1489_s22 + $0x144] ss:$8 sps:$4 sm:$0xff]   ;;  %v1094_v15 = vld [vmem:[%s1489_s22 + $0x140] ss:$8 sps:$4 sm:$0xff]   ;;  %v1095_v16 = vld [vmem:[%s1489_s22 + $0x34] ss:$8 sps:$4 sm:$0xff]  }
  0x59   : > { %647 = vmatpush1.bf16.msra.mxu0 %v1081_v6  ;;  %v1097_v17 = vld [vmem:[%s1489_s22 + $0x134] ss:$8 sps:$4 sm:$0xff]   ;;  %v1099_v18 = vld [vmem:[%s1489_s22 + $0x30] ss:$8 sps:$4 sm:$0xff]   ;;  %v1101_v20 = vld [vmem:[%s1489_s22 + $0x24] ss:$8 sps:$4 sm:$0xff]  }
  0x5a   : > { %688 = vmatpush1.bf16.msra.mxu1 %v1082_v7  ;;  %648 = vmatprep.subr.bf16.mxu0 %v1083_v8  ;;  %v1100_v19 = vld [vmem:[%s1489_s22 + $0x130] ss:$8 sps:$4 sm:$0xff]   ;;  %v1103_v21 = vld [vmem:[%s1489_s22 + $0x124] ss:$8 sps:$4 sm:$0xff]   ;;  %v1105_v22 = vld [vmem:[%s1489_s22 + $0x20] ss:$8 sps:$4 sm:$0xff]  }
  0x5b   : > { %689 = vmatprep.subr.bf16.mxu1 %v1085_v9  ;;  %v1106_v23 = vld [vmem:[%s1489_s22 + $0x120] ss:$8 sps:$4 sm:$0xff]   ;;  %v1107_v24 = vld [vmem:[%s1489_s22 + $0x14] ss:$8 sps:$4 sm:$0xff]   ;;  %v1111_v26 = vld [vmem:[%s1489_s22 + $0x10] ss:$8 sps:$4 sm:$0xff]  }
  0x5c   : > { %v1109_v25 = vld [vmem:[%s1489_s22 + $0x114] ss:$8 sps:$4 sm:$0xff]   ;;  %v1112_v27 = vld [vmem:[%s1489_s22 + $0x110] ss:$8 sps:$4 sm:$0xff]   ;;  %v1113_v28 = vld [vmem:[%s1489_s22 + $0x4] ss:$8 sps:$4 sm:$0xff]  }
  0x5d   : > { %649 = vmatpush1.bf16.msra.mxu0 %v1087_v10  ;;  %v1115_v29 = vld [vmem:[%s1489_s22 + $0x104] ss:$8 sps:$4 sm:$0xff]   ;;  %v1117_v30 = vld [vmem:[%s1489_s22] ss:$8 sps:$4 sm:$0xff]   ;;  %v1119_v32 = vld [vmem:[%s1489_s22 + $0xf4] ss:$8 sps:$4 sm:$0xff]  }
  0x5e   : > { %690 = vmatpush1.bf16.msra.mxu1 %v1088_v11  ;;  %650 = vmatprep.subr.bf16.mxu0 %v1089_v12  ;;  %v1118_v31 = vld [vmem:[%s1489_s22 + $0x100] ss:$8 sps:$4 sm:$0xff]   ;;  %v1121_v33 = vld [vmem:[%s1489_s22 + $0x1f4] ss:$8 sps:$4 sm:$0xff]   ;;  %v1123_v34 = vld [vmem:[%s1489_s22 + $0xf0] ss:$8 sps:$4 sm:$0xff]  }
  0x5f   : > { %691 = vmatprep.subr.bf16.mxu1 %v1091_v13  ;;  %v1124_v35 = vld [vmem:[%s1489_s22 + $0x1f0] ss:$8 sps:$4 sm:$0xff]   ;;  %v1125_v36 = vld [vmem:[%s1489_s22 + $0xe4] ss:$8 sps:$4 sm:$0xff]   ;;  %v1129_v38 = vld [vmem:[%s1489_s22 + $0xe0] ss:$8 sps:$4 sm:$0xff]  }
  0x60   : > { %v1127_v37 = vld [vmem:[%s1489_s22 + $0x1e4] ss:$8 sps:$4 sm:$0xff]   ;;  %v1130_v39 = vld [vmem:[%s1489_s22 + $0x1e0] ss:$8 sps:$4 sm:$0xff]   ;;  %v1131_v40 = vld [vmem:[%s1489_s22 + $0xd4] ss:$8 sps:$4 sm:$0xff]  }
  0x61   : > { %651 = vmatpush1.bf16.msra.mxu0 %v1093_v14  ;;  %v1133_v41 = vld [vmem:[%s1489_s22 + $0x1d4] ss:$8 sps:$4 sm:$0xff]   ;;  %v1135_v42 = vld [vmem:[%s1489_s22 + $0xd0] ss:$8 sps:$4 sm:$0xff]   ;;  %v1137_v44 = vld [vmem:[%s1489_s22 + $0xc4] ss:$8 sps:$4 sm:$0xff]  }
  0x62   : > { %692 = vmatpush1.bf16.msra.mxu1 %v1094_v15  ;;  %652 = vmatprep.subr.bf16.mxu0 %v1095_v16  ;;  %v1136_v43 = vld [vmem:[%s1489_s22 + $0x1d0] ss:$8 sps:$4 sm:$0xff]   ;;  %v1139_v45 = vld [vmem:[%s1489_s22 + $0x1c4] ss:$8 sps:$4 sm:$0xff]   ;;  %v1141_v49 = vld [vmem:[%s1489_s22 + $0xc0] ss:$8 sps:$4 sm:$0xff]  }
  0x63   : > { %693 = vmatprep.subr.bf16.mxu1 %v1097_v17  ;;  %v317_v46 = vld [vmem:[#allocation5 + $0x8] sm:$0xff]  ;;  %v319_v48 = vld [vmem:[#allocation5 + $0x18] sm:$0xff]  ;;  %v316_v4 = vld [vmem:[#allocation5] sm:$0xff]  ;;  %s929_s26 = sshll.u32 %s1485_s9, 4  ;;  %s1001_s7 = sshll.u32 %s1375_s19, 8 }
  0x64   : > { %v321_v47 = vpack.c.bf16 %v317_v46, %v317_v46  ;;  %v1142_v50 = vld [vmem:[%s1489_s22 + $0x1c0] ss:$8 sps:$4 sm:$0xff]   ;;  %v323_v51 = vpack.c.bf16 %v319_v48, %v319_v48  ;;  %v1143_v52 = vld [vmem:[%s1489_s22 + $0xb4] ss:$8 sps:$4 sm:$0xff]   ;;  %v1147_v54 = vld [vmem:[%s1489_s22 + $0xb0] ss:$8 sps:$4 sm:$0xff]   ;;  %v320_v6 = vpack.c.bf16 %v316_v4, %v316_v4  ;;  %s799_s25 = scalar_lea.hbm %s1607_s3, %s1001_s7 }
  0x65   : > { %653 = vmatpush1.bf16.msra.mxu0 %v1099_v18  ;;  %v1145_v53 = vld [vmem:[%s1489_s22 + $0x1b4] ss:$8 sps:$4 sm:$0xff]   ;;  %v1148_v55 = vld [vmem:[%s1489_s22 + $0x1b0] ss:$8 sps:$4 sm:$0xff]   ;;  %v1149_v56 = vld [vmem:[%s1489_s22 + $0xa4] ss:$8 sps:$4 sm:$0xff]  }
  0x66   : > { %694 = vmatpush1.bf16.msra.mxu1 %v1100_v19  ;;  %654 = vmatprep.subr.bf16.mxu0 %v1101_v20  ;;  %v1151_v57 = vld [vmem:[%s1489_s22 + $0x1a4] ss:$8 sps:$4 sm:$0xff]   ;;  %v1153_v58 = vld [vmem:[%s1489_s22 + $0xa0] ss:$8 sps:$4 sm:$0xff]   ;;  %v1155_v60 = vld [vmem:[%s1489_s22 + $0x94] ss:$8 sps:$4 sm:$0xff]  }
  0x67   : > { %695 = vmatprep.subr.bf16.mxu1 %v1103_v21  ;;  %676 = vmatprep.mubr.bf16.mxu0 %v321_v47  ;;  %v1154_v59 = vld [vmem:[%s1489_s22 + $0x1a0] ss:$8 sps:$4 sm:$0xff]   ;;  %v1157_v61 = vld [vmem:[%s1489_s22 + $0x194] ss:$8 sps:$4 sm:$0xff]   ;;  %v1159_v62 = vld [vmem:[%s1489_s22 + $0x90] ss:$8 sps:$4 sm:$0xff]  }
  0x68   : > { %717 = vmatprep.mubr.bf16.mxu1 %v323_v51  ;;  %v1160_v63 = vld [vmem:[%s1489_s22 + $0x190] ss:$8 sps:$4 sm:$0xff]   ;;  %v1161_v0 = vld [vmem:[%s1489_s22 + $0x84] ss:$8 sps:$4 sm:$0xff]   ;;  %v1165_v2 = vld [vmem:[%s1489_s22 + $0x80] ss:$8 sps:$4 sm:$0xff]  }
  0x69   : > { %655 = vmatpush1.bf16.msra.mxu0 %v1105_v22  ;;  %v1163_v1 = vld [vmem:[%s1489_s22 + $0x184] ss:$8 sps:$4 sm:$0xff]   ;;  %v1166_v3 = vld [vmem:[%s1489_s22 + $0x180] ss:$8 sps:$4 sm:$0xff]   ;;  %v318_v5 = vld [vmem:[#allocation5 + $0x10] sm:$0xff]  ;;  %s241_s29 = scalar_lea.vmem [#allocation8], %s929_s26 }
  0x6a   : > { %696 = vmatpush1.bf16.msra.mxu1 %v1106_v23  ;;  %656 = vmatprep.subr.bf16.mxu0 %v1107_v24  ;;  %v322_v7 = vpack.c.bf16 %v318_v5, %v318_v5  ;;  %s801_s8 = sshll.u32 %s241_s29, 4  ;;  %s783_s13 = scalar_lea.sflag [#allocation4], %s1485_s9  ;;  %s802_s8 = int_to_ptr.vmem [resolvable:$true] %s801_s8 }
  0x6b   : > { %697 = vmatprep.subr.bf16.mxu1 %v1109_v25  ;;  %s1253_s23 = scalar_lea.vmem %s802_s8, 256  ;;  %p1625_p0 = scmp.ne.s32.totalorder %s1615_s27, 0 }
  0x6c   : > { %p1254_p2 = scmp.ne.s32.totalorder %s802_s8, %s1253_s23  ;;  %s1328_s30 = smov [#allocation8]  }
  0x6d   : > { %657 = vmatpush1.bf16.msra.mxu0 %v1111_v26  ;;  %s1257_s5 = sshll.u32 %s1328_s30, 4  ;;  %s1258_s5 = int_to_ptr.vmem [resolvable:$false] %s1257_s5 }
  0x6e   : > { %698 = vmatpush1.bf16.msra.mxu1 %v1112_v27  ;;  %658 = vmatprep.subr.bf16.mxu0 %v1113_v28  ;;  %v747_v28 = vlaneseq  ;;  %p1255_p4 = pnand %p1254_p2, %p1625_p0  ;;  %s1259_s10 = scalar_lea.vmem %s1258_s5, 512 }
  0x6f   : > { %699 = vmatprep.subr.bf16.mxu1 %v1115_v29  ;;  %p1260_p9 = scmp.lt.s32.totalorder %s802_s8, %s1258_s5  ;;  %p1261_p10 = scmp.lt.s32.totalorder %s1259_s10, %s1253_s23 }
  0x70   : > { %v748_v29 = vshrl.u32 %v747_v28, 7  ;;  %p1256_p5 = pneg %p1255_p4 }
  0x71   : > { %659 = vmatpush1.bf16.msra.mxu0 %v1117_v30  ;;  %p1262_p1 = por %p1261_p10, %p1260_p9 }
  0x72   : > { %700 = vmatpush1.bf16.msra.mxu1 %v1118_v31  ;;  %660 = vmatprep.subr.bf16.mxu0 %v1119_v32  ;;  %v749_v30 = vsub.s32 0, %v748_v29  ;;  %v753_v31 = vsub.s32 1, %v748_v29  ;;  %v743_v32 = vld [vmem:[#allocation7] ss:$2 sm:$0x3] }
  0x73   : > { %701 = vmatprep.subr.bf16.mxu1 %v1121_v33  ;;  %v745_v33 = vld [vmem:[#allocation7 + $0x1] ss:$2 sm:$0x3]  ;;  %p1263_p12 = pnand %p1262_p1, %p1256_p5 }
  0x75   : > { %661 = vmatpush2.bf16.msra.mxu0 %v1123_v34  ;;  %v750_v34 = vrot.slane %v743_v32, %v749_v30 }
  0x76   : > { %702 = vmatpush2.bf16.msra.mxu1 %v1124_v35  ;;  %662 = vmatprep.subr.bf16.mxu0 %v1125_v36  ;;  %v754_v35 = vrot.slane %v743_v32, %v753_v31 }
  0x77   : > { %703 = vmatprep.subr.bf16.mxu1 %v1127_v37 }
  0x79   : > { %663 = vmatpush2.bf16.msra.mxu0 %v1129_v38 }
  0x7a   : > { %704 = vmatpush2.bf16.msra.mxu1 %v1130_v39  ;;  %664 = vmatprep.subr.bf16.mxu0 %v1131_v40  ;;  %v768_v39 = vrot.slane %v745_v33, %v749_v30  ;;  %v772_v40 = vrot.slane %v745_v33, %v753_v31 }
  0x7b   : > { %705 = vmatprep.subr.bf16.mxu1 %v1133_v41 }
  0x7d   : > { %665 = vmatpush2.bf16.msra.mxu0 %v1135_v42 }
  0x7e   : > { %706 = vmatpush2.bf16.msra.mxu1 %v1136_v43  ;;  %666 = vmatprep.subr.bf16.mxu0 %v1137_v44 }
  0x7f   : > { %707 = vmatprep.subr.bf16.mxu1 %v1139_v45 }
  0x81   : > { %667 = vmatpush2.bf16.msra.mxu0 %v1141_v49 }
  0x82   : > { %708 = vmatpush2.bf16.msra.mxu1 %v1142_v50  ;;  %668 = vmatprep.subr.bf16.mxu0 %v1143_v52 }
  0x83   : > { %709 = vmatprep.subr.bf16.mxu1 %v1145_v53 }
  0x85   : > { %669 = vmatpush2.bf16.msra.mxu0 %v1147_v54 }
  0x86   : > { %710 = vmatpush2.bf16.msra.mxu1 %v1148_v55  ;;  %670 = vmatprep.subr.bf16.mxu0 %v1149_v56 }
  0x87   : > { %711 = vmatprep.subr.bf16.mxu1 %v1151_v57 }
  0x89   : > { %671 = vmatpush2.bf16.msra.mxu0 %v1153_v58 }
  0x8a   : > { %712 = vmatpush2.bf16.msra.mxu1 %v1154_v59  ;;  %672 = vmatprep.subr.bf16.mxu0 %v1155_v60 }
  0x8b   : > { %713 = vmatprep.subr.bf16.mxu1 %v1157_v61 }
  0x8d   : > { %673 = vmatpush2.bf16.msra.mxu0 %v1159_v62 }
  0x8e   : > { %714 = vmatpush2.bf16.msra.mxu1 %v1160_v63  ;;  %674 = vmatprep.subr.bf16.mxu0 %v1161_v0 }
  0x8f   : > { %715 = vmatprep.subr.bf16.mxu1 %v1163_v1 }
  0x91   : > { %675 = vmatpush2.bf16.msra.mxu0 %v1165_v2 }
  0x92   : > { %716 = vmatpush2.bf16.msra.mxu1 %v1166_v3 }
  0x94   : > { %677 = vmatmul.mubr.bf16.vlgmr.msra.gmra.mxu0 %v320_v6 }
  0x95   : > { %718 = vmatmul.mubr.bf16.vlgmr.msra.gmra.mxu1 %v322_v7 }
 0x154   : > { %v678_v8 = vpop.f32.mrf.mxu0 }
 0x155   : > { %v719_v9 = vpop.f32.mrf.mxu1 }
 0x156   : > { %v680_v10 = vpop.f32.mrf.mxu0  ;;  %v720_v12 = vadd.f32 %v719_v9, %v678_v8 }
 0x157   : > { %v721_v11 = vpop.f32.mrf.mxu1 }
 0x158   : > { %v722_v13 = vadd.f32 %v721_v11, %v680_v10  ;;  %v682_v14 = vpop.f32.mrf.mxu0 }
 0x159   : > { %v723_v15 = vpop.f32.mrf.mxu1 }
 0x15a   : > { %v726_v16 = vmax.f32 %v720_v12, %v722_v13  ;;  %v683_v17 = vpop.f32.mrf.mxu0 }
 0x15b   : > { %v724_v18 = vpop.f32.mrf.mxu1 }
 0x15c   : > { %727 = vmax.xlane.f32.xlu0 %v726_v16 }
 0x1e5   : > { %v728_v19 = vpop.xlane.xlu0 %727 }
 0x1e6   : > { %v729_v20 = vsub.f32 %v720_v12, %v728_v19  ;;  %v730_v21 = vsub.f32 %v722_v13, %v728_v19 }
 0x1e8   : > { %v731_v22 = vmul.f32 1.442695, %v729_v20  ;;  %v733_v23 = vmul.f32 1.442695, %v730_v21 }
 0x1ea   : > { %1167 = vpow2.f32 %v731_v22 }
 0x1eb   : > { %1169 = vpow2.f32 %v733_v23 }
 0x1f7   : > { %v1168_v24 = vpop.eup %1167 }
 0x1f8   : > { %v1170_v25 = vpop.eup %1169 }
 0x1f9   : > { %v735_v26 = vadd.f32 %v1170_v25, %v1168_v24 }
 0x1fb   : > { %736 = vadd.xlane.f32.xlu0 %v735_v26 }
 0x284   : > { %v737_v27 = vpop.xlane.xlu0 %736 }
 0x285   : > { %1171 = vrcp.f32 %v737_v27 }
 0x292   : > { %v1172_v36 = vpop.eup %1171 }
 0x293   : > { %v739_v37 = vmul.f32 %v1172_v36, %v1168_v24  ;;  %v740_v38 = vmul.f32 %v1172_v36, %v1170_v25 }
 0x295   : > { %v757_v41 = vmul.f32 %v750_v34, %v739_v37  ;;  %v758_v42 = vmul.f32 %v754_v35, %v740_v38  ;;  %741 = vst [vmem:[%s241_s29] sm:$0xff] %v739_v37  ;;  %742 = vst [vmem:[%s241_s29 + $0x8] sm:$0xff] %v740_v38  ;;  %v775_v44 = vmul.f32 %v768_v39, %v739_v37 }
 0x296   : > { %v776_v45 = vmul.f32 %v772_v40, %v740_v38 }
 0x297   : > { %v759_v43 = vadd.f32 %v758_v42, %v757_v41 }
 0x298   : > { %v777_v46 = vadd.f32 %v776_v45, %v775_v44 }
 0x299   : > { %760 = vadd.xlane.f32.xlu1 %v759_v43 }
 0x29d   : > { %778 = vadd.xlane.f32.xlu1 %v777_v46 }
 0x29e   : > { %1266 = shalt.err (!%p1263_p12)
}
 0x29f   : > { %s1267_s12 = scalar_lea.hbm %s799_s25, 256  ;;  %s1271_s20 = scalar_lea.hbm %s1607_s3, 512 }
 0x2a0   : > { %p1268_p6 = scmp.ne.s32.totalorder %s799_s25, %s1267_s12  ;;  %p1272_p13 = scmp.lt.s32.totalorder %s799_s25, %s1607_s3 }
 0x2a1   : > { %p1273_p3 = scmp.lt.s32.totalorder %s1271_s20, %s1267_s12 }
 0x2a2   : > { %p1269_p7 = pnand %p1268_p6, %p1625_p0 }
 0x2a3   : > { %p1274_p8 = por %p1273_p3, %p1272_p13 }
 0x2a4   : > { %p1270_p11 = pneg %p1269_p7 }
 0x2a6   : > { %p1275_p2 = pnand %p1274_p8, %p1270_p11 }
 0x2a8   : > { %1278 = shalt.err (!%p1275_p2)
}
 0x2a9   : > { %1012 = dma.vmem_to_hbm [thread:$0]  (%p1625_p0), %s802_s8, 256, %s799_s25, %s783_s13   ;;  %vm762_vm0 = vcmask 7168   ;;  %vm780_vm1 = vcmask 15368  }
 0x2aa   : > { %p248_p4 = scmp.lt.s32.totalorder %s1375_s19, 1 }
 0x2ac   : > { %s1633_s19 = smov (!%p248_p4, %s1375_s19), 1 }
 0x2ad   : > { %s930_s29 = sshll.u32 %s1633_s19, 3 }
 0x2ae   : > { %s251_s6 = scalar_lea.vmem %s1608_s4, %s930_s29 }
 0x322   : > { %v761_v47 = vpop.xlane.xlu1 %760 }
 0x323   : > { %763 = vst.msk [vmem:[%s251_s6] sm:$0xff] %vm762_vm0, %v761_v47 }
 0x326   : > { %v779_v48 = vpop.xlane.xlu1 %778 }
 0x327   : > { %781 = vst.msk [vmem:[%s251_s6] sm:$0xff] %vm780_vm1, %v779_v48 }
 0x328 PF: > { %s816_s27 = sand.u32 1, %s1309_s15   ;;  %p1626_p5 = scmp.ne.s32.totalorder %s1616_s28, 0 }
 0x329   : > { %p1627_p0 = scmp.ge.s32.totalorder %s1321_s18, 2  ;;  %s817_s19 = scalar_lea.sflag [#allocation4], %s816_s27 }
 0x32b   : > { %p1026_p9 = pnand %p1627_p0, %p1626_p5 }
 0x32d   : > { %p1027_p10 = pneg %p1026_p9 }
 0x32f   : > { %1304 = dma.done.wait (%p1027_p10), %s817_s19, 256  }
 0x330   : > { %1306 = vsyncadd (%p1027_p10), %s817_s19, 4294967040  ;;  %p19_p1 = scmp.ge.s32.totalorder %s1379_s21, 4   ;;  %s1628_s15 = smov %s1313_s16 }
 0x331   : > { %s1629_s16 = smov %s1317_s17  ;;  %s1630_s17 = smov %s1391_s24 }
 0x332   : > { %s1631_s18 = smov %s1379_s21  ;;  %21 = sbr.rel (!%p19_p1) target bundleno = 6 (0x6), region = 98 }
 0x337   :  { %829 = vsyncpa [#allocation3], 1 }
 0x338   :  { %831 = vsyncpa [#allocation3 + $0x1], 1 }
 0x339   :  { %832 = vsyncpa [#allocation6], 1 }
 0x33a   :  { %833 = vsyncpa [#allocation4], 1 }
 0x33b   :  { %835 = vsyncpa [#allocation4 + $0x1], 1 }

</bundles_post_ra>
